<compile_context>
chip_gen: v6e
topology: v6e:2x2x1
jax: 0.10.0
libtpu: 0.0.40
codegen_flags: <defaults>
</compile_context>

<pallas_src>
import functools

import jax
import jax.numpy as jnp
from jax.experimental import pallas as pl
from jax.experimental.pallas import tpu as pltpu

LANE = 128
SUB = 8


def _round_up(x, m):
    return (x + m - 1) // m * m


def _im2col_kernel(x_ref, w_ref, shift_ref, o_ref):
    # x_ref:     (M_TILE, KC_p)     bf16  (tap-packed im2col rows)
    # w_ref:     (KC_p, C_out_p)    bf16  (BN scale pre-folded)
    # shift_ref: (1, C_out_p)       f32
    # o_ref:     (M_TILE, C_out_p)  bf16
    acc = jnp.dot(x_ref[...], w_ref[...], preferred_element_type=jnp.float32)
    o_ref[...] = jnp.maximum(acc + shift_ref[...], 0.0).astype(o_ref.dtype)


def _roll_kernel(x_ref, w_ref, shift_ref, o_ref, *, K, dilation):
    # Fallback for large K*C_in: per-tap matmul + XLU roll, accumulated in a
    # register value and stored exactly once.
    # x_ref: (M_TILE, C_in_p) bf16 (whole samples), w_ref: (K, C_in_p, C_out_p)
    m = x_ref.shape[0]
    x = x_ref[...]
    acc = jnp.dot(x, w_ref[0], preferred_element_type=jnp.float32)
    for k in range(1, K):
        p = jnp.dot(x, w_ref[k], preferred_element_type=jnp.float32)
        # out[r] += x[r + k*dilation] @ w[k]; wrapped rows land only in the
        # per-sample alignment padding, which the wrapper discards.
        acc = acc + pltpu.roll(p, m - k * dilation, axis=0)
    o_ref[...] = jnp.maximum(acc + shift_ref[...], 0.0).astype(o_ref.dtype)


def tdnn_layer(x_nct, weight, gamma, beta, running_mean, running_var, *,
               kernel_size, stride=1, padding=-1, dilation=1, bias=None,
               eps=1e-5):
    """x_nct: (N, C_in, T) f32 -> (N, C_out, T_out) f32 (Conv1d + BN(eval) + ReLU)."""
    assert stride == 1, "TODO(synk): only stride=1 (module default) supported"
    N, C_in, T = x_nct.shape
    C_out = weight.shape[0]
    K = kernel_size
    if padding < 0:
        assert K % 2 == 1
        padding = (K - 1) // 2 * dilation
    T_pad = T + 2 * padding
    T_out = T_pad - dilation * (K - 1)
    assert T_out > 0

    C_out_p = _round_up(C_out, LANE)

    # Fold eval-mode BatchNorm1d (and optional conv bias) into the conv weight
    # scale and a per-channel shift.
    scale = gamma / jnp.sqrt(running_var + eps)                       # (C_out,)
    shift = beta - running_mean * scale                               # (C_out,)
    if bias is not None:
        shift = shift + bias * scale
    shift_p = jnp.pad(shift, (0, C_out_p - C_out)).reshape(1, C_out_p)
    shift_p = shift_p.astype(jnp.float32)

    # --- glue (XLA): NCT -> NTC with conv zero padding in time.
    # TODO(synk): this transpose/pad and the inverse on the output are extra
    # HBM passes; keep the flattened NTC layout as the interchange format when
    # fusing adjacent layers.
    x_ntc = jnp.transpose(x_nct, (0, 2, 1))
    x_ntc = jnp.pad(x_ntc, ((0, 0), (padding, padding), (0, 0)))

    out_dtype = jnp.bfloat16   # halves lane-padded HBM writeback; cast back below
    out_bytes = 2

    # im2col only when it does not inflate input bytes vs the padded C_in.
    use_im2col = _round_up(K * C_in, LANE) <= _round_up(C_in, LANE)

    if use_im2col:
        KC = K * C_in
        KC_p = _round_up(KC, LANE)
        R = _round_up(T_out, SUB)
        # x_col[n, t, k*C_in + ci] = x_pad[n, t + k*dilation, ci]
        x_col = jnp.concatenate(
            [x_ntc[:, k * dilation:k * dilation + T_out, :] for k in range(K)],
            axis=-1)                                           # (N, T_out, KC)
        x_col = jnp.pad(x_col, ((0, 0), (0, R - T_out), (0, KC_p - KC)))
        x_flat = x_col.reshape(N * R, KC_p).astype(jnp.bfloat16)

        # w_col[k*C_in + ci, co] = weight[co, ci, k] * scale[co]
        w_col = jnp.transpose(weight, (2, 1, 0)).reshape(KC, C_out) * scale[None, :]
        w_col = jnp.pad(w_col, ((0, KC_p - KC), (0, C_out_p - C_out)))
        w_col = w_col.astype(jnp.bfloat16)

        M_total = N * R
        bytes_per_row = KC_p * 2 + C_out_p * out_bytes
        rows_budget = (8 * 2 ** 20) // bytes_per_row
        M_TILE = max(SUB, (min(4096, rows_budget) // SUB) * SUB)
        M_TILE = min(M_TILE, _round_up(M_total, SUB))
        M_pad = _round_up(M_total, M_TILE)
        if M_pad > M_total:
            x_flat = jnp.pad(x_flat, ((0, M_pad - M_total), (0, 0)))
        grid = (M_pad // M_TILE,)

        kernel = _im2col_kernel
        in_specs = [
            pl.BlockSpec((M_TILE, KC_p), lambda i: (i, 0)),
            pl.BlockSpec((KC_p, C_out_p), lambda i: (0, 0)),
            pl.BlockSpec((1, C_out_p), lambda i: (0, 0)),
        ]
        args = (x_flat, w_col, shift_p)
        weight_bytes = KC_p * C_out_p * 2
    else:
        C_in_p = _round_up(C_in, LANE)
        R = _round_up(T_pad, SUB)
        x_p = jnp.pad(x_ntc, ((0, 0), (0, R - T_pad), (0, C_in_p - C_in)))
        x_flat = x_p.reshape(N * R, C_in_p).astype(jnp.bfloat16)

        w_kic = jnp.transpose(weight, (2, 1, 0)) * scale[None, None, :]
        w_kic = jnp.pad(w_kic, ((0, 0), (0, C_in_p - C_in), (0, C_out_p - C_out)))
        w_kic = w_kic.astype(jnp.bfloat16)

        bytes_per_row = C_in_p * 2 + C_out_p * out_bytes
        rows_budget = (8 * 2 ** 20) // bytes_per_row
        # Whole samples per grid step so conv windows never cross a tile.
        # TODO(synk): no halo'd time tiling yet for a single very long sample.
        B_TILE = max(1, min(N, min(4096, rows_budget) // R))
        N_pad = _round_up(N, B_TILE)
        if N_pad > N:
            x_flat = jnp.pad(x_flat, ((0, (N_pad - N) * R), (0, 0)))
        M_TILE = B_TILE * R
        M_pad = N_pad * R
        grid = (N_pad // B_TILE,)

        kernel = functools.partial(_roll_kernel, K=K, dilation=dilation)
        in_specs = [
            pl.BlockSpec((M_TILE, C_in_p), lambda i: (i, 0)),
            pl.BlockSpec((K, C_in_p, C_out_p), lambda i: (0, 0, 0)),
            pl.BlockSpec((1, C_out_p), lambda i: (0, 0)),
        ]
        args = (x_flat, w_kic, shift_p)
        weight_bytes = K * C_in_p * C_out_p * 2

    # VMEM budget: double-buffered in/out blocks + (double-buffered) weights
    # and shift.  Cap well below v7x's 64 MiB per-TC VMEM.
    need = 2 * M_TILE * bytes_per_row + 2 * weight_bytes + 2 * C_out_p * 4
    vmem_limit = int(min(48 * 2 ** 20, max(16 * 2 ** 20, 2 * need)))

    out_flat = pl.pallas_call(
        kernel,
        out_shape=jax.ShapeDtypeStruct((M_pad, C_out_p), out_dtype),
        grid_spec=pltpu.PrefetchScalarGridSpec(
            num_scalar_prefetch=0,
            grid=grid,
            in_specs=in_specs,
            out_specs=pl.BlockSpec((M_TILE, C_out_p), lambda i: (i, 0)),
        ),
        compiler_params=pltpu.CompilerParams(
            dimension_semantics=("parallel",),
            vmem_limit_bytes=vmem_limit),
    )(*args)

    # --- glue (XLA): un-flatten, drop alignment/channel padding, back to NCT.
    out = out_flat[:N * R].reshape(N, R, C_out_p)[:, :T_out, :C_out]
    return jnp.transpose(out, (0, 2, 1)).astype(jnp.float32)   # (N, C_out, T_out)


def _reference(x_nct, weight, gamma, beta, running_mean, running_var,
               *, kernel_size, padding, dilation, eps=1e-5):
    # Pure-JAX f32 reference: Conv1d + eval BatchNorm1d + ReLU.
    y = jax.lax.conv_general_dilated(
        x_nct, weight,
        window_strides=(1,),
        padding=[(padding, padding)],
        rhs_dilation=(dilation,),
        dimension_numbers=("NCH", "OIH", "NCH"))
    scale = (gamma / jnp.sqrt(running_var + eps)).reshape(1, -1, 1)
    shift = (beta - running_mean * gamma / jnp.sqrt(running_var + eps)).reshape(1, -1, 1)
    return jnp.maximum(y * scale + shift, 0.0)


if __name__ == "__main__":
    # Shapes consistent with TDNNLayer(in_channels=32, out_channels=32,
    # kernel_size=3, padding=-1 -> same padding), input (N=2, C=32, T=16).
    N, C_in, C_out, T, K, DIL = 2, 32, 32, 16, 3, 1
    PAD = (K - 1) // 2 * DIL

    key = jax.random.PRNGKey(0)
    kx, kw, kg, kb, km, kv = jax.random.split(key, 6)

    x = jax.random.normal(kx, (N, C_in, T), jnp.float32)
    weight = jax.random.normal(kw, (C_out, C_in, K), jnp.float32) * 0.1  # Conv1d, bias=False
    gamma = 1.0 + 0.1 * jax.random.normal(kg, (C_out,), jnp.float32)
    beta = 0.1 * jax.random.normal(kb, (C_out,), jnp.float32)
    running_mean = 0.1 * jax.random.normal(km, (C_out,), jnp.float32)
    running_var = 0.5 + jnp.abs(jax.random.normal(kv, (C_out,), jnp.float32))

    out = tdnn_layer(x, weight, gamma, beta, running_mean, running_var,
                     kernel_size=K, stride=1, padding=-1, dilation=DIL)
    out = jax.block_until_ready(out)

    ref = _reference(x, weight, gamma, beta, running_mean, running_var,
                     kernel_size=K, padding=PAD, dilation=DIL)
    assert out.shape == (N, C_out, T), out.shape
    max_err = float(jnp.max(jnp.abs(out - ref)))
    # bf16 MXU inputs / bf16 output store with f32 accumulation: loosened
    # tolerance vs the f32 reference (inference-grade numerics).
    assert jnp.allclose(out, ref, atol=1e-1, rtol=2e-2), max_err

    print("KERNEL_OK")
</pallas_src>

<mosaic_0001>
module attributes {stable_mosaic.version = 11 : i64} {
  func.func @_im2col_kernel(%arg0: i32, %arg1: memref<32x128xbf16, #tpu.memory_space<vmem>>, %arg2: memref<128x128xbf16, #tpu.memory_space<vmem>>, %arg3: memref<1x128xf32, #tpu.memory_space<vmem>>, %arg4: memref<32x128xbf16, #tpu.memory_space<vmem>>) attributes {dimension_semantics = [#tpu.dimension_semantics<parallel>], iteration_bounds = array<i64: 1>, scalar_prefetch = 0 : i64, scratch_operands = 0 : i64, tpu.core_type = #tpu.core_type<tc>, window_params = [{transform_indices = @transform_0, window_bounds = array<i64: 32, 128>}, {pipeline_mode = #tpu.pipeline_mode<synchronous>, transform_indices = @transform_1, window_bounds = array<i64: 128, 128>}, {pipeline_mode = #tpu.pipeline_mode<synchronous>, transform_indices = @transform_2, window_bounds = array<i64: 1, 128>}, {transform_indices = @transform_3, window_bounds = array<i64: 32, 128>}]} {
    %c0 = arith.constant 0 : index
    %c0_0 = arith.constant 0 : index
    %0 = vector.load %arg1[%c0, %c0_0] : memref<32x128xbf16, #tpu.memory_space<vmem>>, vector<32x128xbf16>
    %c0_1 = arith.constant 0 : index
    %c0_2 = arith.constant 0 : index
    %1 = vector.load %arg2[%c0_1, %c0_2] : memref<128x128xbf16, #tpu.memory_space<vmem>>, vector<128x128xbf16>
    %cst = arith.constant dense<0.000000e+00> : vector<32x128xf32>
    %2 = tpu.matmul %0, %1, %cst {dimension_numbers = #tpu.dot_dimension_numbers<[1], [0], [0], [1], [0, 0, 1, 1], [], []>} : vector<32x128xbf16>, vector<128x128xbf16>, vector<32x128xf32> -> vector<32x128xf32>
    %c0_3 = arith.constant 0 : index
    %c0_4 = arith.constant 0 : index
    %3 = vector.load %arg3[%c0_3, %c0_4] : memref<1x128xf32, #tpu.memory_space<vmem>>, vector<1x128xf32>
    %4 = vector.broadcast %3 : vector<1x128xf32> to vector<32x128xf32>
    %5 = arith.addf %2, %4 : vector<32x128xf32>
    %cst_5 = arith.constant 0.000000e+00 : f32
    %6 = vector.broadcast %cst_5 : f32 to vector<32x128xf32>
    %7 = arith.maximumf %5, %6 : vector<32x128xf32>
    %8 = arith.truncf %7 : vector<32x128xf32> to vector<32x128xbf16>
    %c0_6 = arith.constant 0 : index
    %c0_7 = arith.constant 0 : index
    %9 = vector.load %arg4[%c0_6, %c0_7] : memref<32x128xbf16, #tpu.memory_space<vmem>>, vector<32x128xbf16>
    tpu.vector_store %arg4[%c0_6, %c0_7], %8 {strides = array<i32>} : memref<32x128xbf16, #tpu.memory_space<vmem>>, vector<32x128xbf16>,
    return
  }
  func.func @transform_0(%arg0: i32) -> (i32, i32) {
    %c0_i32 = arith.constant 0 : i32
    %c0_i32_0 = arith.constant 0 : i32
    return %arg0, %c0_i32 : i32, i32
  }
  func.func @transform_1(%arg0: i32) -> (i32, i32) {
    %c0_i32 = arith.constant 0 : i32
    %c0_i32_0 = arith.constant 0 : i32
    %c0_i32_1 = arith.constant 0 : i32
    return %c0_i32, %c0_i32_0 : i32, i32
  }
  func.func @transform_2(%arg0: i32) -> (i32, i32) {
    %c0_i32 = arith.constant 0 : i32
    %c0_i32_0 = arith.constant 0 : i32
    %c0_i32_1 = arith.constant 0 : i32
    return %c0_i32, %c0_i32_0 : i32, i32
  }
  func.func @transform_3(%arg0: i32) -> (i32, i32) {
    %c0_i32 = arith.constant 0 : i32
    %c0_i32_0 = arith.constant 0 : i32
    return %arg0, %c0_i32 : i32, i32
  }
}

</mosaic_0001>

<bundles_post_ra>
// kernel: tpu_custom_call.1
= control target key start
LH: loop header
LB: loop body
LE: loop exit
PB: predicated region body
PF: predicated region fallthrough
CT: control target
= control target key end

     0   :  { %8 = vsyncpa [#allocation3], 0  ;;  %s409_s0 = inlined_call_operand.hbm [shape: bf16[32,128], index: 0, kind: input, shape index: {}]   ;;  %s410_s1 = inlined_call_operand.hbm [shape: bf16[128,128], index: 1, kind: input, shape index: {}]   ;;  %s411_s2 = inlined_call_operand.vmem [shape: f32[1,128], index: 2, kind: input, shape index: {}]   ;;  %s412_s3 = inlined_call_operand.hbm [shape: bf16[32,128], index: 3, kind: output, shape index: {}]  }
   0x1   :  { %9 = vsyncpa [#allocation6], 0 }
   0x2   :  { %10 = vsyncpa [#allocation4], 0  ;;  %s363_s12 = smov [#allocation2]  }
   0x3   :  { %s16_s13 = sshll.u32 %s363_s12, 4  ;;  %s17_s13 = int_to_ptr.vmem [resolvable:$true] %s16_s13 }
   0x4   :  { %s305_s14 = scalar_lea.vmem %s17_s13, 256  ;;  %p310_p1 = scmp.lt.s32.totalorder %s17_s13, %s17_s13 }
   0x5   :  { %p306_p0 = scmp.ne.s32.totalorder %s17_s13, %s305_s14  ;;  %p311_p2 = scmp.lt.s32.totalorder %s305_s14, %s305_s14 }
   0x7   :  { %p312_p3 = por %p311_p2, %p310_p1 }
   0x9   :  { %p313_p4 = pnand %p312_p3, %p306_p0 }
   0xb   :  { %316 = shalt.err (!%p313_p4)
}
   0xc   :  { %s364_s15 = smov 64   ;;  %s365_s16 = smov 4  }
   0xd   :  { %22 = dma.hbm_to_vmem [thread:$0]  %s409_s0, 256, %s17_s13, [#allocation3], %s364_s15, %s364_s15, %s365_s16  }
   0xe   :  { %s366_s19 = smov [#allocation5]  }
   0xf   :  { %s28_s20 = sshll.u32 %s366_s19, 4  ;;  %s29_s20 = int_to_ptr.vmem [resolvable:$true] %s28_s20 }
  0x10   :  { %s325_s21 = scalar_lea.vmem %s29_s20, 1024  ;;  %p330_p6 = scmp.lt.s32.totalorder %s29_s20, %s29_s20 }
  0x11   :  { %p326_p5 = scmp.ne.s32.totalorder %s29_s20, %s325_s21  ;;  %p331_p7 = scmp.lt.s32.totalorder %s325_s21, %s325_s21 }
  0x13   :  { %p332_p8 = por %p331_p7, %p330_p6 }
  0x15   :  { %p333_p9 = pnand %p332_p8, %p326_p5 }
  0x17   :  { %336 = shalt.err (!%p333_p9)
}
  0x18   :  { %34 = dma.hbm_to_vmem [thread:$0]  %s410_s1, 1024, %s29_s20, [#allocation6], %s364_s15, %s364_s15, %s365_s16  }
  0x19   :  { %357 = dma.done.wait [#allocation3], 256  }
  0x1a   :  { %358 = vsyncadd [#allocation3], 4294967040 }
  0x1b   :  { %359 = dma.done.wait [#allocation6], 1024  }
  0x1c   :  { %360 = vsyncadd [#allocation6], 4294966272  ;;  %v287_v0 = vld [vmem:[#allocation5 + $0x38] sm:$0xff]   ;;  %v288_v1 = vld [vmem:[#allocation5 + $0x30] sm:$0xff]   ;;  %s367_s24 = smov [#allocation7]  }
  0x1d   :  { %262 = vmatprep.subr.bf16.mxu0 %v287_v0  ;;  %v289_v2 = vld [vmem:[#allocation5 + $0x28] sm:$0xff]   ;;  %v290_v3 = vld [vmem:[#allocation5 + $0x20] sm:$0xff]   ;;  %v295_v4 = vld [vmem:[#allocation2] sm:$0xff]   ;;  %s209_s25 = sshll.u32 %s367_s24, 4  ;;  %s210_s25 = int_to_ptr.vmem [resolvable:$true] %s209_s25 }
  0x1e   :  { %263 = vmatpush3.bf16.msra.mxu0 %v287_v0  ;;  %278 = vmatprep.mubr.bf16.mxu0 %v295_v4  ;;  %v291_v5 = vld [vmem:[#allocation5 + $0x18] sm:$0xff]   ;;  %v292_v6 = vld [vmem:[#allocation5 + $0x10] sm:$0xff]   ;;  %v293_v7 = vld [vmem:[#allocation5 + $0x8] sm:$0xff]   ;;  %s337_s26 = scalar_lea.vmem %s210_s25, 256  ;;  %p342_p11 = scmp.lt.s32.totalorder %s210_s25, %s210_s25 }
  0x1f   :  { %264 = vmatprep.subr.bf16.mxu0 %v288_v1  ;;  %v294_v8 = vld [vmem:[#allocation5] sm:$0xff]   ;;  %v296_v9 = vld [vmem:[#allocation2 + $0x8] sm:$0xff]   ;;  %v222_v11 = vld [vmem:[%s411_s2] ss:$0 sm:$0xff]  ;;  %p338_p10 = scmp.ne.s32.totalorder %s210_s25, %s337_s26  ;;  %p343_p12 = scmp.lt.s32.totalorder %s337_s26, %s337_s26 }
  0x21   :  { %p344_p13 = por %p343_p12, %p342_p11 }
  0x22   :  { %265 = vmatpush3.bf16.msra.mxu0 %v288_v1 }
  0x23   :  { %266 = vmatprep.subr.bf16.mxu0 %v289_v2  ;;  %p345_p0 = pnand %p344_p13, %p338_p10 }
  0x26   :  { %267 = vmatpush3.bf16.msra.mxu0 %v289_v2 }
  0x27   :  { %268 = vmatprep.subr.bf16.mxu0 %v290_v3 }
  0x2a   :  { %269 = vmatpush3.bf16.msra.mxu0 %v290_v3 }
  0x2b   :  { %270 = vmatprep.subr.bf16.mxu0 %v291_v5 }
  0x2e   :  { %271 = vmatpush3.bf16.msra.mxu0 %v291_v5 }
  0x2f   :  { %272 = vmatprep.subr.bf16.mxu0 %v292_v6 }
  0x32   :  { %273 = vmatpush3.bf16.msra.mxu0 %v292_v6 }
  0x33   :  { %274 = vmatprep.subr.bf16.mxu0 %v293_v7 }
  0x36   :  { %275 = vmatpush3.bf16.msra.mxu0 %v293_v7 }
  0x37   :  { %276 = vmatprep.subr.bf16.mxu0 %v294_v8 }
  0x3a   :  { %277 = vmatpush3.bf16.msra.mxu0 %v294_v8 }
  0x3d   :  { %279 = vmatmul.mubr.bf16.vlgmr.msra.gmra.mxu0 %v296_v9 }
  0xfd   :  { %v280_v10 = vpop.f32.mrf.mxu0 }
  0xfe   :  { %v174_v13 = vadd.f32 %v280_v10, %v222_v11 }
  0xff   :  { %v165_v12 = vpop.f32.mrf.mxu0 }
 0x100   :  { %v166_v15 = vadd.f32 %v222_v11, %v165_v12  ;;  %v182_v18 = vmax.f32 %v174_v13, 0.0 }
 0x101   :  { %v281_v14 = vpop.f32.mrf.mxu0 }
 0x102   :  { %v177_v16 = vadd.f32 %v281_v14, %v222_v11  ;;  %v180_v21 = vmax.f32 %v166_v15, 0.0 }
 0x103   :  { %v168_v17 = vpop.f32.mrf.mxu0 }
 0x104   :  { %v183_v19 = vmax.f32 %v177_v16, 0.0  ;;  %v169_v20 = vadd.f32 %v222_v11, %v168_v17 }
 0x106   :  { %v249_v22 = vpack.c.bf16 %v183_v19, %v182_v18  ;;  %v181_v23 = vmax.f32 %v169_v20, 0.0 }
 0x108   :  { %251 = vst [vmem:[#allocation7 + $0x8] sm:$0xff] %v249_v22   ;;  %v244_v24 = vpack.c.bf16 %v181_v23, %v180_v21 }
 0x10a   :  { %245 = vst [vmem:[#allocation7] sm:$0xff] %v244_v24  }
 0x10b   :  { %348 = shalt.err (!%p345_p0)
}
 0x10c   :  { %215 = dma.vmem_to_hbm [thread:$0]  %s210_s25, 256, %s412_s3, [#allocation4], %s364_s15, %s364_s15, %s365_s16  }
 0x10d   :  { %361 = dma.done.wait [#allocation4], 256  }
 0x10e   :  { %362 = vsyncadd [#allocation4], 4294967040 }
 0x10f   :  { %219 = vsyncpa [#allocation3], 1 }
 0x110   :  { %220 = vsyncpa [#allocation6], 1 }
 0x111   :  { %221 = vsyncpa [#allocation4], 1 }

</bundles_post_ra>
